<compile_context>
chip_gen: v7x
topology: tpu7x:2x2x1
jax: 0.10.0
libtpu: 0.0.40
codegen_flags: <defaults>
</compile_context>

<pallas_src>
import functools

import jax
import jax.numpy as jnp
from jax.experimental import pallas as pl
from jax.experimental.pallas import tpu as pltpu


def _round_up(x, m):
    return (x + m - 1) // m * m


def _contrastive_loss_kernel(x1_ref, x2_ref, y_ref, part_ref, *,
                             margin, batch, block_b, chunk, needs_mask):
    """Writes the (unscaled) per-tile partial sum of the contrastive loss."""
    i = pl.program_id(0)
    n_chunks = block_b // chunk

    def chunk_loss(row0):
        # Load in source dtype, widen to f32 for the math / accumulation.
        x1 = x1_ref[pl.ds(row0, chunk), :].astype(jnp.float32)      # (chunk, D)
        x2 = x2_ref[pl.ds(row0, chunk), :].astype(jnp.float32)      # (chunk, D)
        diff = x1 - x2
        dist_sq = jnp.sum(diff * diff, axis=1, keepdims=True)       # (chunk, 1)
        dist = jnp.sqrt(dist_sq)
        mdist = jnp.maximum(margin - dist, 0.0)                     # clamp(margin - dist, 0)
        y = y_ref[pl.ds(row0, chunk), :].astype(jnp.float32)        # (chunk, 1)
        loss = y * dist_sq + (1.0 - y) * (mdist * mdist)            # (chunk, 1)
        if needs_mask:
            # Mask rows past the real batch size (partial last tile reads
            # undefined VMEM -> possibly NaN/Inf; mask is the LAST op before
            # the sum, so nothing unmasked is ever accumulated).
            row = (i * block_b + row0
                   + jax.lax.broadcasted_iota(jnp.int32, loss.shape, 0))
            loss = jnp.where(row < batch, loss, 0.0)
        return jnp.sum(loss, keepdims=True)                         # (1, 1)

    if n_chunks == 1:
        total = chunk_loss(0)
    else:
        def body(c, acc):
            row0 = pl.multiple_of(c * chunk, chunk)
            return acc + chunk_loss(row0)

        total = jax.lax.fori_loop(0, n_chunks, body,
                                  jnp.zeros((1, 1), jnp.float32),
                                  unroll=(n_chunks <= 8))

    part_ref[...] = total.reshape(1, 1, 1)


def contrastive_loss(input1, input2, y, margin=1.0):
    """Pallas TPU equivalent of ContrastiveLoss(margin).forward(input1, input2, y)."""
    assert input1.shape == input2.shape and input1.ndim == 2
    B, D = input1.shape

    itemsize = jnp.dtype(input1.dtype).itemsize
    assert itemsize in (1, 2, 4), f"unsupported input dtype {input1.dtype}"
    sub = {4: 8, 2: 16, 1: 32}[itemsize]          # sublane multiple per dtype

    y2d = y.reshape(B, 1).astype(jnp.float32)     # tiny; fine to cast in wrapper

    # VMEM bytes per batch row per pipeline buffer:
    #   (tb, D) x1 + x2 tiles in source dtype, plus the (tb, 1) f32 y tile,
    #   which pads to a full 128-lane row in VMEM.
    bytes_per_row = 2 * D * itemsize + 128 * 4
    budget = 16 * 1024 * 1024                     # 2 pipeline buffers of all inputs
    tb = budget // (2 * bytes_per_row)
    tb = max(sub, (tb // sub) * sub)
    tb = min(tb, _round_up(B, sub))
    # Megacore (v7x): keep >= 4 tiles (>= 2 per TensorCore) when B allows.
    if B >= 4 * sub:
        tb = min(tb, _round_up(pl.cdiv(B, 4), sub))
    # In-kernel row chunking bounds vreg pressure so tb can be large.
    chunk = min(tb, 256)
    if tb % chunk:
        tb = (tb // chunk) * chunk

    num_tiles = pl.cdiv(B, tb)
    needs_mask = (B % tb) != 0

    kernel = functools.partial(
        _contrastive_loss_kernel,
        margin=float(margin), batch=B, block_b=tb, chunk=chunk,
        needs_mask=needs_mask)

    cost = pl.CostEstimate(
        flops=3 * B * D + 8 * B,
        transcendentals=B,
        bytes_accessed=2 * B * D * itemsize + B * 4 + num_tiles * 4,
    )

    # Note: default double-buffering (Buffered(2)) is kept; with multi-MiB
    # steps the DMA issue latency is already hidden.
    partials = pl.pallas_call(
        kernel,
        out_shape=jax.ShapeDtypeStruct((num_tiles, 1, 1), jnp.float32),
        grid_spec=pltpu.PrefetchScalarGridSpec(
            num_scalar_prefetch=0,
            grid=(num_tiles,),
            in_specs=[
                pl.BlockSpec((tb, D), lambda i: (i, 0)),   # full (unpadded) D
                pl.BlockSpec((tb, D), lambda i: (i, 0)),
                pl.BlockSpec((tb, 1), lambda i: (i, 0)),
            ],
            out_specs=pl.BlockSpec((1, 1, 1), lambda i: (i, 0, 0)),
        ),
        compiler_params=pltpu.CompilerParams(
            dimension_semantics=("parallel",),
            vmem_limit_bytes=32 * 1024 * 1024,
        ),
        cost_estimate=cost,
    )(input1, input2, y2d)

    # Tiny final reduce over per-tile partials + single fused 0.5/B scale.
    return jnp.sum(partials) * (0.5 / B)


def _reference(input1, input2, y, margin=1.0):
    diff = input1.astype(jnp.float32) - input2.astype(jnp.float32)
    dist_sq = jnp.sum(diff ** 2, axis=1)
    dist = jnp.sqrt(dist_sq)
    mdist = jnp.maximum(margin - dist, 0.0)
    loss = y * dist_sq + (1 - y) * mdist ** 2
    return jnp.sum(loss) / 2.0 / input1.shape[0]


if __name__ == "__main__":
    key = jax.random.PRNGKey(0)
    k1, k2, k3 = jax.random.split(key, 3)

    # Small demo shape consistent with the module's forward.
    B, D = 8, 32
    input1 = jax.random.normal(k1, (B, D), dtype=jnp.float32)
    input2 = jax.random.normal(k2, (B, D), dtype=jnp.float32)
    y = (jax.random.uniform(k3, (B,)) > 0.5).astype(jnp.float32)

    out = contrastive_loss(input1, input2, y, margin=1.0)
    out = jax.block_until_ready(out)

    ref = _reference(input1, input2, y, margin=1.0)
    assert jnp.allclose(out, ref, rtol=1e-5, atol=1e-5), (out, ref)

    # Extra pin: D % 128 != 0 and B % tile != 0 path (masked remainder rows).
    B2, D2 = 37, 100
    a1 = jax.random.normal(k1, (B2, D2), dtype=jnp.float32)
    a2 = jax.random.normal(k2, (B2, D2), dtype=jnp.float32)
    y2 = (jax.random.uniform(k3, (B2,)) > 0.5).astype(jnp.float32)
    out2 = jax.block_until_ready(contrastive_loss(a1, a2, y2, margin=1.0))
    ref2 = _reference(a1, a2, y2, margin=1.0)
    assert jnp.allclose(out2, ref2, rtol=1e-5, atol=1e-5), (out2, ref2)

    print("KERNEL_OK")
</pallas_src>

<mosaic_0001>
module attributes {stable_mosaic.version = 11 : i64} {
  func.func @_contrastive_loss_kernel(%arg0: i32, %arg1: memref<8x32xf32, #tpu.memory_space<vmem>>, %arg2: memref<8x32xf32, #tpu.memory_space<vmem>>, %arg3: memref<8x1xf32, #tpu.memory_space<vmem>>, %arg4: memref<1x1x1xf32, #tpu.memory_space<vmem>>) attributes {dimension_semantics = [#tpu.dimension_semantics<parallel>], iteration_bounds = array<i64: 1>, scalar_prefetch = 0 : i64, scratch_operands = 0 : i64, tpu.core_type = #tpu.core_type<tc>, window_params = [{transform_indices = @transform_0, window_bounds = array<i64: 8, 32>}, {transform_indices = @transform_1, window_bounds = array<i64: 8, 32>}, {transform_indices = @transform_2, window_bounds = array<i64: 8, 1>}, {transform_indices = @transform_3, window_bounds = array<i64: 1, 1, 1>}]} {
    %c0 = arith.constant 0 : index
    %c0_0 = arith.constant 0 : index
    %0 = vector.load %arg1[%c0, %c0_0] : memref<8x32xf32, #tpu.memory_space<vmem>>, vector<8x32xf32>
    %c0_1 = arith.constant 0 : index
    %c0_2 = arith.constant 0 : index
    %1 = vector.load %arg2[%c0_1, %c0_2] : memref<8x32xf32, #tpu.memory_space<vmem>>, vector<8x32xf32>
    %2 = arith.subf %0, %1 : vector<8x32xf32>
    %3 = arith.mulf %2, %2 : vector<8x32xf32>
    %cst = arith.constant dense<0.000000e+00> : vector<8xf32>
    %4 = vector.multi_reduction <add>, %3, %cst [1] : vector<8x32xf32> to vector<8xf32>
    %5 = vector.shape_cast %4 : vector<8xf32> to vector<8x1xf32>
    %6 = math.sqrt %5 : vector<8x1xf32>
    %cst_3 = arith.constant 1.000000e+00 : f32
    %7 = vector.broadcast %cst_3 : f32 to vector<8x1xf32>
    %8 = arith.subf %7, %6 : vector<8x1xf32>
    %cst_4 = arith.constant 0.000000e+00 : f32
    %9 = vector.broadcast %cst_4 : f32 to vector<8x1xf32>
    %10 = arith.maximumf %8, %9 : vector<8x1xf32>
    %c0_5 = arith.constant 0 : index
    %c0_6 = arith.constant 0 : index
    %11 = vector.load %arg3[%c0_5, %c0_6] : memref<8x1xf32, #tpu.memory_space<vmem>>, vector<8x1xf32>
    %12 = arith.mulf %11, %5 : vector<8x1xf32>
    %cst_7 = arith.constant 1.000000e+00 : f32
    %13 = vector.broadcast %cst_7 : f32 to vector<8x1xf32>
    %14 = arith.subf %13, %11 : vector<8x1xf32>
    %15 = arith.mulf %10, %10 : vector<8x1xf32>
    %16 = arith.mulf %14, %15 : vector<8x1xf32>
    %17 = arith.addf %12, %16 : vector<8x1xf32>
    %18 = vector.shape_cast %17 : vector<8x1xf32> to vector<1x8x1xf32>
    %cst_8 = arith.constant dense<0.000000e+00> : vector<1xf32>
    %19 = vector.multi_reduction <add>, %18, %cst_8 [1, 2] : vector<1x8x1xf32> to vector<1xf32>
    %20 = vector.shape_cast %19 : vector<1xf32> to vector<1x1x1xf32>
    %21 = vector.extract %20[0, 0, 0] : f32 from vector<1x1x1xf32>
    %22 = vector.broadcast %21 : f32 to vector<1x1xf32>
    %23 = vector.shape_cast %22 : vector<1x1xf32> to vector<1x1x1xf32>
    %c0_9 = arith.constant 0 : index
    %c0_10 = arith.constant 0 : index
    %c0_11 = arith.constant 0 : index
    %24 = vector.load %arg4[%c0_9, %c0_10, %c0_11] : memref<1x1x1xf32, #tpu.memory_space<vmem>>, vector<1x1x1xf32>
    tpu.vector_store %arg4[%c0_9, %c0_10, %c0_11], %23 {strides = array<i32>} : memref<1x1x1xf32, #tpu.memory_space<vmem>>, vector<1x1x1xf32>,
    return
  }
  func.func @transform_0(%arg0: i32) -> (i32, i32) {
    %c0_i32 = arith.constant 0 : i32
    %c0_i32_0 = arith.constant 0 : i32
    return %arg0, %c0_i32 : i32, i32
  }
  func.func @transform_1(%arg0: i32) -> (i32, i32) {
    %c0_i32 = arith.constant 0 : i32
    %c0_i32_0 = arith.constant 0 : i32
    return %arg0, %c0_i32 : i32, i32
  }
  func.func @transform_2(%arg0: i32) -> (i32, i32) {
    %c0_i32 = arith.constant 0 : i32
    %c0_i32_0 = arith.constant 0 : i32
    return %arg0, %c0_i32 : i32, i32
  }
  func.func @transform_3(%arg0: i32) -> (i32, i32, i32) {
    %c0_i32 = arith.constant 0 : i32
    %c0_i32_0 = arith.constant 0 : i32
    %c0_i32_1 = arith.constant 0 : i32
    return %arg0, %c0_i32, %c0_i32_0 : i32, i32, i32
  }
}

</mosaic_0001>

<bundles_post_ra>
// kernel: tpu_custom_call.1
= control target key start
LH: loop header
LB: loop body
LE: loop exit
PB: predicated region body
PF: predicated region fallthrough
CT: control target
= control target key end

     0   :  { %8 = vsyncpa [#allocation3], 0  ;;  %s185_s0 = inlined_call_operand.vmem [shape: f32[8,32], index: 0, kind: input, shape index: {}]   ;;  %s186_s1 = inlined_call_operand.hbm [shape: f32[8,32], index: 1, kind: input, shape index: {}]   ;;  %s187_s2 = inlined_call_operand.vmem [shape: f32[8,1], index: 2, kind: input, shape index: {}]   ;;  %s188_s3 = inlined_call_operand.hbm [shape: f32[1,1,1], index: 3, kind: output, shape index: {}]  }
   0x1   :  { %9 = vsyncpa [#allocation4], 0  ;;  %s133_s12 = smov [#allocation2]   ;;  %s85_s16 = scalar_lea.hbm %s186_s1, 128 }
   0x2   :  { %s18_s13 = sshll.u32 %s133_s12, 4  ;;  %p86_p0 = scmp.ne.s32.totalorder %s186_s1, %s85_s16  ;;  %s19_s13 = int_to_ptr.vmem [resolvable:$true] %s18_s13 }
   0x3   :  { %p89_p1 = scmp.lt.u32.totalorder %s85_s16, %s186_s1 }
   0x5   :  { %p91_p2 = pnand %p89_p1, %p86_p0 }
   0x7   :  { %94 = shalt.err (!%p91_p2)
}
   0x8   :  { %s95_s21 = scalar_lea.vmem %s19_s13, 128  ;;  %p100_p4 = scmp.lt.s32.totalorder %s19_s13, %s19_s13 }
   0x9   :  { %p96_p3 = scmp.ne.s32.totalorder %s19_s13, %s95_s21  ;;  %p101_p5 = scmp.lt.s32.totalorder %s95_s21, %s95_s21 }
   0xb   :  { %p102_p6 = por %p101_p5, %p100_p4 }
   0xd   :  { %p103_p7 = pnand %p102_p6, %p96_p3 }
   0xf   :  { %106 = shalt.err (!%p103_p7)
}
  0x10   :  { %21 = dma.hbm_to_vmem [thread:$0]  %s186_s1, 128, %s19_s13, [#allocation3]  }
  0x11   :  { %129 = dma.done.wait [#allocation3], 128  }
  0x12   :  { %130 = vsyncadd [#allocation3], 4294967168  ;;  %v27_v0 = vld [vmem:[%s185_s0] sm:$0xff]  ;;  %vm31_vm0 = vcmask 261120   ;;  %vm50_vm3 = vcmask 7168   ;;  %s134_s0 = smov [#allocation5]  }
  0x13   :  { %v28_v1 = vld [vmem:[#allocation2] sm:$0xff]  ;;  %s70_s27 = sshll.u32 %s134_s0, 4  ;;  %vm62_vm4 = vcmask 0   ;;  %s71_s27 = int_to_ptr.vmem [resolvable:$true] %s70_s27 }
  0x14   :  { %v29_v2 = vsub.f32 %v27_v0, %v28_v1  ;;  %v44_v12 = vld [vmem:[%s187_s2] sm:$0xff]  ;;  %s107_s28 = scalar_lea.vmem %s71_s27, 16  ;;  %s111_s29 = scalar_lea.vmem %s71_s27, 32 }
  0x15   :  { %v46_v14 = vsub.f32 1.0, %v44_v12  ;;  %p108_p8 = scmp.ne.s32.totalorder %s71_s27, %s107_s28  ;;  %p112_p9 = scmp.lt.s32.totalorder %s71_s27, %s71_s27 }
  0x16   :  { %v30_v3 = vmul.f32 %v29_v2, %v29_v2  ;;  %p113_p10 = scmp.lt.s32.totalorder %s111_s29, %s107_s28 }
  0x18   :  { %v32_v4 = vsel %vm31_vm0, %v30_v3, 0.0  ;;  %p114_p11 = por %p113_p10, %p112_p9 }
  0x19   :  { %33 = vadd.xlane.f32.xlu0 %v32_v4 }
  0x1a   :  { %p115_p12 = pnand %p114_p11, %p108_p8 }
  0xa6   :  { %v34_v5 = vpop.xlane.xlu0 %33 }
  0xa7   :  { %83 = vrsqrt.f32 %v34_v5  ;;  %vm37_vm1 = vcmp.eq.f32.partialorder %v34_v5, inf  ;;  %v40_v8 = vand.u32 2147483648, %v34_v5  ;;  %vm39_vm2 = vcmp.eq.f32.partialorder %v34_v5, 0.0 }
  0xa8   :  { %v45_v16 = vmul.f32 %v44_v12, %v34_v5 }
  0xb1   :  { %v84_v6 = vpop.eup %83 }
  0xb2   :  { %v36_v7 = vmul.f32 %v84_v6, %v34_v5 }
  0xb4   :  { %v38_v9 = vsel %vm37_vm1, %v34_v5, %v36_v7 }
  0xb5   :  { %v41_v10 = vsel %vm39_vm2, %v40_v8, %v38_v9 }
  0xb6   :  { %v42_v11 = vsub.f32 1.0, %v41_v10 }
  0xb8   :  { %v43_v13 = vmax.f32 %v42_v11, 0.0 }
  0xba   :  { %v47_v15 = vmul.f32 %v43_v13, %v43_v13 }
  0xbc   :  { %v48_v17 = vmul.f32 %v47_v15, %v46_v14 }
  0xbe   :  { %v49_v18 = vadd.f32 %v48_v17, %v45_v16 }
  0xc0   :  { %v51_v19 = vsel %vm50_vm3, %v49_v18, 0.0 }
  0xc1   :  { %52 = vadd.xlane.f32.xlu0 %v51_v19 }
 0x14e   :  { %v53_v20 = vpop.xlane.xlu0 %52 }
 0x14f   :  { %v54_v21 = vrot.slane %v53_v20, 4 }
 0x151   :  { %v55_v22 = vadd.f32 %v54_v21, %v53_v20 }
 0x153   :  { %v56_v23 = vrot.slane %v55_v22, 2 }
 0x155   :  { %v57_v24 = vadd.f32 %v56_v23, %v55_v22 }
 0x157   :  { %v58_v25 = vrot.slane %v57_v24, 1 }
 0x159   :  { %v59_v26 = vadd.f32 %v58_v25, %v57_v24 }
 0x15b   :  { %79 = vpush %v59_v26 }
 0x18c   :  { %s80_s2 = spop %79 }
 0x18d   :  { %v61_v27 = vstv %s80_s2 }
 0x18e   :  { %63 = vst.msk [vmem:[#allocation5] sm:$0x1] %vm62_vm4, %v61_v27 }
 0x18f   :  { %118 = shalt.err (!%p115_p12)
}
 0x190   :  { %s119_s5 = scalar_lea.hbm %s188_s3, 16 }
 0x191   :  { %p120_p13 = scmp.ne.s32.totalorder %s188_s3, %s119_s5  ;;  %p123_p0 = scmp.lt.u32.totalorder %s119_s5, %s188_s3 }
 0x193   :  { %p125_p1 = pnand %p123_p0, %p120_p13 }
 0x195   :  { %128 = shalt.err (!%p125_p1)
}
 0x196   :  { %73 = dma.vmem_to_hbm [thread:$0]  %s71_s27, 16, %s188_s3, [#allocation4]  }
 0x197   :  { %131 = dma.done.wait [#allocation4], 16  }
 0x198   :  { %132 = vsyncadd [#allocation4], 4294967280 }
 0x199   :  { %77 = vsyncpa [#allocation3], 1 }
 0x19a   :  { %78 = vsyncpa [#allocation4], 1 }

</bundles_post_ra>
